<compile_context>
chip_gen: v5e
topology: v5e:2x2
jax: 0.10.0
libtpu: 0.0.40
codegen_flags: <defaults>
</compile_context>

<pallas_src>
import math

import jax
import jax.numpy as jnp
from jax.experimental import pallas as pl
from jax.experimental.pallas import tpu as pltpu


# ----------------------------------------------------------------------------
# Compatibility helpers (degrade gracefully on older JAX versions)
# ----------------------------------------------------------------------------
def _block_spec(shape, index_map, buffers=None):
    """BlockSpec with an optional pipeline depth hint (pl.Buffered)."""
    buffered = getattr(pl, "Buffered", None)
    if buffers is not None and buffered is not None:
        try:
            return pl.BlockSpec(shape, index_map, pipeline_mode=buffered(buffers))
        except Exception:
            pass
    return pl.BlockSpec(shape, index_map)


def _cost_estimate(flops, bytes_accessed):
    ce_cls = getattr(pl, "CostEstimate", None)
    if ce_cls is None:
        return None
    try:
        return ce_cls(flops=int(flops), transcendentals=0,
                      bytes_accessed=int(bytes_accessed))
    except Exception:
        return None


def _vmem_capacity_bytes():
    try:
        return int(pltpu.get_tpu_info().vmem_capacity_bytes)
    except Exception:
        return 64 << 20          # conservative: v7x per-TensorCore VMEM


# ----------------------------------------------------------------------------
# Pallas kernels
# ----------------------------------------------------------------------------
def _resize_kron_kernel(m_ref, x_ref, o_ref):
    # m: (K, P) fused bilinear matrix, K = H_in*W_in, P = H_out*W_out
    # x: (TB, K) flattened input planes     o: (TB, P) flattened output planes
    # One big lane-dense MXU matmul per grid step; f32 accumulation.
    x = x_ref[...]
    if x.dtype != m_ref.dtype:
        x = x.astype(m_ref.dtype)
    o_ref[...] = jnp.dot(
        x, m_ref[...], preferred_element_type=jnp.float32
    ).astype(o_ref.dtype)


def _resize_separable_kernel(aht_ref, awt_ref, x_ref, o_ref):
    # aht: (H_in, H_out)  awt: (W_in, W_out)   (pre-transposed on the host)
    # x  : (TB, H_in, W_in)  ->  o: (TB, H_out, W_out)
    # Matrices stay as a single resident copy (no broadcast_to); both matmuls
    # are flat 2-D with TB folded into the M dimension; one XLU minor-dims
    # transpose moves H_in to the contraction (minor) position.
    tb, h_in, w_in = x_ref.shape
    h_out = aht_ref.shape[1]
    w_out = awt_ref.shape[1]
    op_dt = awt_ref.dtype

    x = x_ref[...]
    if x.dtype != op_dt:
        x = x.astype(op_dt)

    # Width pass: (TB*H_in, W_in) @ (W_in, W_out) -> f32 intermediate.
    t = jnp.dot(x.reshape(tb * h_in, w_in), awt_ref[...],
                preferred_element_type=jnp.float32)            # (TB*H_in, W_out)

    # Height pass: bring H_in minor, then (TB*W_out, H_in) @ (H_in, H_out).
    t = jnp.swapaxes(t.reshape(tb, h_in, w_out), 1, 2)          # (TB, W_out, H_in)
    t = t.reshape(tb * w_out, h_in).astype(op_dt)
    u = jnp.dot(t, aht_ref[...], preferred_element_type=jnp.float32)

    o_ref[...] = jnp.swapaxes(u.reshape(tb, w_out, h_out), 1, 2
                              ).astype(o_ref.dtype)


# ----------------------------------------------------------------------------
# Host-side interpolation-matrix construction (PyTorch align_corners=False)
# ----------------------------------------------------------------------------
def _interp_matrix(out_size: int, in_size: int) -> jnp.ndarray:
    """Dense (out_size, in_size) bilinear matrix matching
    torch.nn.functional.interpolate(mode='bilinear', align_corners=False)."""
    scale = in_size / out_size
    dst = jnp.arange(out_size, dtype=jnp.float32)
    src = scale * (dst + 0.5) - 0.5
    src = jnp.maximum(src, 0.0)                  # PyTorch clamps negatives to 0
    i0 = jnp.floor(src).astype(jnp.int32)
    i0 = jnp.minimum(i0, in_size - 1)
    i1 = jnp.minimum(i0 + 1, in_size - 1)
    lam = src - i0.astype(jnp.float32)
    mat = jnp.zeros((out_size, in_size), dtype=jnp.float32)
    rows = jnp.arange(out_size)
    mat = mat.at[rows, i0].add(1.0 - lam)
    mat = mat.at[rows, i1].add(lam)              # i0==i1 at boundary -> weight 1
    return mat


def _choose_tb(nc: int, per_plane_bytes: int, budget_bytes: int, min_steps: int):
    """Planes per grid step.

    Returns (tb, nc_pad).  tb is either the full leading dim (single block) or
    a multiple of 8 that divides nc_pad, so Mosaic's (8, x) block rule is
    always satisfied and (in the common case) no padding is needed.
    """
    cap = max(8, int(budget_bytes) // max(1, int(per_plane_bytes)))
    if nc <= 8:
        return nc, nc                            # smallest legal tile: full dim
    if nc % 8 != 0:
        if nc <= cap:
            return nc, nc                        # full-dim single block, no pad
        nc_pad = -(-nc // 8) * 8                 # rare ragged + oversized case
    else:
        nc_pad = nc
    m = nc_pad // 8
    cap8 = max(1, cap // 8)
    lim = min(cap8, m)
    divs = [d for d in range(1, lim + 1) if m % d == 0]
    good = [d for d in divs if m // d >= min_steps]
    d = max(good) if good else max(divs)
    return 8 * d, nc_pad


# ----------------------------------------------------------------------------
# Level module wrapper
# ----------------------------------------------------------------------------
class LevelPallas:
    """JAX/Pallas port of the PyTorch `Level` module (fn = Identity)."""

    def __init__(self, image_size: int = 32, patch_size: int = 4, *,
                 kron_max_bytes: int = 8 << 20,
                 use_bf16_matmul: bool = False,
                 min_grid_steps: int = 2,
                 stream_buffers=None):
        self.patch_size = patch_size
        self._bh = self._bw = image_size // patch_size
        self._h = self._w = math.ceil(image_size / patch_size)
        self._needs_resize = not (self._bh == self._h and self._bw == self._w)
        self._out_h = self._h * patch_size
        self._out_w = self._w * patch_size
        self._kron_max_bytes = kron_max_bytes
        self._use_bf16_matmul = use_bf16_matmul      # v5e speed knob for f32 in
        self._min_grid_steps = max(1, min_grid_steps)
        self._stream_buffers = stream_buffers        # None -> default (2)
        # Generation-aware VMEM budgeting: 128 MiB on v5e/v6e, 64 MiB on v7x.
        vmem_cap = _vmem_capacity_bytes()
        self._vmem_limit = min(int(vmem_cap * 3 // 4), 100 << 20)
        self._cache = {}

    # ----- matmul operand dtype ---------------------------------------------
    def _op_dtype(self, dt):
        dt = jnp.dtype(dt)
        if self._use_bf16_matmul or dt in (jnp.dtype(jnp.bfloat16),
                                           jnp.dtype(jnp.float16)):
            return jnp.dtype(jnp.bfloat16)
        return jnp.dtype(jnp.float32)

    # ----- operand preparation (cached per spatial size / matmul dtype) ------
    def _prepare(self, h_in: int, w_in: int, op_dt):
        key = (h_in, w_in, op_dt.name)
        ops = self._cache.get(key)
        if ops is None:
            ah = _interp_matrix(self._out_h, h_in)       # (H_out, H_in), f32
            aw = _interp_matrix(self._out_w, w_in)       # (W_out, W_in), f32
            k = h_in * w_in
            p = self._out_h * self._out_w
            use_kron = k * p * op_dt.itemsize <= self._kron_max_bytes
            ops = {
                "use_kron": use_kron,
                "aht": ah.T.astype(op_dt),               # (H_in, H_out)
                "awt": aw.T.astype(op_dt),               # (W_in, W_out)
            }
            if use_kron:
                # R[(hi,wi),(ho,wo)] = Ah[ho,hi] * Aw[wo,wi]
                ops["kron"] = jnp.kron(ah, aw).T.astype(op_dt)   # (K, P)
            self._cache[key] = ops
        return ops

    # ----- invoke a pallas_call; retry without pipeline hints if rejected ----
    @staticmethod
    def _run(build_call, args):
        try:
            return build_call(True)(*args)
        except Exception:
            return build_call(False)(*args)

    # ------------------------------- forward --------------------------------
    def __call__(self, x: jnp.ndarray) -> jnp.ndarray:
        if not self._needs_resize:
            return x                                     # nn.Identity(): free.

        n, c, h_in, w_in = x.shape
        h_out, w_out = self._out_h, self._out_w
        nc = n * c
        dt = x.dtype
        itemsize = jnp.dtype(dt).itemsize
        op_dt = self._op_dtype(dt)
        ops = self._prepare(h_in, w_in, op_dt)
        nbuf = self._stream_buffers or 2
        cparams = pltpu.CompilerParams(
            dimension_semantics=("parallel",),           # planes are independent
            vmem_limit_bytes=self._vmem_limit,
        )

        if ops["use_kron"]:
            k, p = h_in * w_in, h_out * w_out
            # VMEM budget: be conservative and assume the constant matrix may be
            # double-buffered even though we request pl.Buffered(1).
            matrix_bytes = 2 * k * p * op_dt.itemsize
            block_budget = max(4 << 20, self._vmem_limit - matrix_bytes - (6 << 20))
            per_plane = nbuf * (k + p) * itemsize + (k + p) * 4   # streams + temps
            tb, nc_pad = _choose_tb(nc, per_plane, block_budget, self._min_grid_steps)

            x2 = x.reshape(nc, k)                        # metadata-only reshape
            if nc_pad != nc:
                # TODO(synk): rare case (nc not a multiple of 8 AND too large for
                # one block); a tail pallas_call would avoid this HBM round trip.
                x2 = jnp.pad(x2, ((0, nc_pad - nc), (0, 0)))

            ce = _cost_estimate(
                flops=2 * nc_pad * k * p,
                bytes_accessed=nc_pad * (k + p) * itemsize + k * p * op_dt.itemsize)

            def build_call(use_hints):
                def spec(shape, imap, bufs):
                    return _block_spec(shape, imap, bufs if use_hints else None)
                return pl.pallas_call(
                    _resize_kron_kernel,
                    out_shape=jax.ShapeDtypeStruct((nc_pad, p), dt),
                    grid=(nc_pad // tb,),
                    in_specs=[
                        spec((k, p), lambda i: (0, 0), 1),          # constant matrix
                        spec((tb, k), lambda i: (i, 0), self._stream_buffers),
                    ],
                    out_specs=spec((tb, p), lambda i: (i, 0), self._stream_buffers),
                    compiler_params=cparams,
                    cost_estimate=ce,
                )

            out2 = self._run(build_call, (ops["kron"], x2))
            if nc_pad != nc:
                out2 = out2[:nc]
            return out2.reshape(n, c, h_out, w_out)      # metadata-only reshape

        # Fallback: separable two-pass resize (spatial sizes too large for the
        # fused kron matrix).
        in_e, out_e = h_in * w_in, h_out * w_out
        per_plane = nbuf * (in_e + out_e) * itemsize + 4 * (in_e + out_e + h_in * w_out)
        block_budget = max(4 << 20, self._vmem_limit - (8 << 20))
        tb, nc_pad = _choose_tb(nc, per_plane, block_budget, self._min_grid_steps)

        x3 = x.reshape(nc, h_in, w_in)
        if nc_pad != nc:
            # TODO(synk): same rare ragged case as above.
            x3 = jnp.pad(x3, ((0, nc_pad - nc), (0, 0), (0, 0)))

        ce = _cost_estimate(
            flops=2 * nc_pad * (h_in * w_in * w_out + w_out * h_in * h_out),
            bytes_accessed=nc_pad * (in_e + out_e) * itemsize
                           + (h_in * h_out + w_in * w_out) * op_dt.itemsize)

        def build_call(use_hints):
            def spec(shape, imap, bufs):
                return _block_spec(shape, imap, bufs if use_hints else None)
            return pl.pallas_call(
                _resize_separable_kernel,
                out_shape=jax.ShapeDtypeStruct((nc_pad, h_out, w_out), dt),
                grid=(nc_pad // tb,),
                in_specs=[
                    spec((h_in, h_out), lambda i: (0, 0), 1),
                    spec((w_in, w_out), lambda i: (0, 0), 1),
                    spec((tb, h_in, w_in), lambda i: (i, 0, 0), self._stream_buffers),
                ],
                out_specs=spec((tb, h_out, w_out), lambda i: (i, 0, 0),
                               self._stream_buffers),
                compiler_params=cparams,
                cost_estimate=ce,
            )

        out3 = self._run(build_call, (ops["aht"], ops["awt"], x3))
        if nc_pad != nc:
            out3 = out3[:nc]
        return out3.reshape(n, c, h_out, w_out)


# ----------------------------------------------------------------------------
# Demo / smoke test
# ----------------------------------------------------------------------------
if __name__ == "__main__":
    key = jax.random.PRNGKey(0)

    # Case 1: image_size divisible by patch_size -> identity path.
    x1 = jax.random.normal(key, (2, 4, 16, 16), dtype=jnp.float32)
    level_id = LevelPallas(image_size=16, patch_size=4)
    y1 = level_id(x1)
    jax.block_until_ready(y1)
    assert y1.shape == x1.shape
    assert bool(jnp.allclose(y1, x1))

    # Case 2: non-divisible -> bilinear resize (fused kron kernel).
    # image_size=18, patch_size=4  =>  output spatial = ceil(18/4)*4 = 20.
    key2 = jax.random.fold_in(key, 1)
    x2 = jax.random.normal(key2, (2, 4, 18, 18), dtype=jnp.float32)
    level_rs = LevelPallas(image_size=18, patch_size=4)
    y2 = level_rs(x2)
    jax.block_until_ready(y2)
    assert y2.shape == (2, 4, 20, 20)

    # Reference: half-pixel bilinear resize == PyTorch align_corners=False for
    # upsampling.  Tolerance is generous because MXU matmuls on f32 operands
    # may execute as bf16 passes depending on generation / default precision.
    ref = jax.image.resize(x2, (2, 4, 20, 20), method="bilinear")
    assert bool(jnp.allclose(y2, ref, atol=2e-2, rtol=2e-3)), "kron path mismatch"

    # Case 3: force the separable fallback kernel on the same data.
    level_sep = LevelPallas(image_size=18, patch_size=4, kron_max_bytes=0)
    y3 = level_sep(x2)
    jax.block_until_ready(y3)
    assert y3.shape == (2, 4, 20, 20)
    assert bool(jnp.allclose(y3, ref, atol=2e-2, rtol=2e-3)), "separable path mismatch"

    print("KERNEL_OK")
</pallas_src>

<mosaic_0001>
module attributes {stable_mosaic.version = 11 : i64} {
  func.func @_resize_kron_kernel(%arg0: i32, %arg1: memref<324x400xf32, #tpu.memory_space<vmem>>, %arg2: memref<8x324xf32, #tpu.memory_space<vmem>>, %arg3: memref<8x400xf32, #tpu.memory_space<vmem>>) attributes {dimension_semantics = [#tpu.dimension_semantics<parallel>], iteration_bounds = array<i64: 1>, scalar_prefetch = 0 : i64, scratch_operands = 0 : i64, tpu.core_type = #tpu.core_type<tc>, window_params = [{pipeline_mode = #tpu.pipeline_mode<synchronous>, transform_indices = @transform_0, window_bounds = array<i64: 324, 400>}, {transform_indices = @transform_1, window_bounds = array<i64: 8, 324>}, {transform_indices = @transform_2, window_bounds = array<i64: 8, 400>}]} {
    %c0 = arith.constant 0 : index
    %c0_0 = arith.constant 0 : index
    %0 = vector.load %arg2[%c0, %c0_0] : memref<8x324xf32, #tpu.memory_space<vmem>>, vector<8x324xf32>
    %c0_1 = arith.constant 0 : index
    %c0_2 = arith.constant 0 : index
    %1 = vector.load %arg1[%c0_1, %c0_2] : memref<324x400xf32, #tpu.memory_space<vmem>>, vector<324x400xf32>
    %cst = arith.constant dense<0.000000e+00> : vector<8x400xf32>
    %2 = tpu.matmul %0, %1, %cst {dimension_numbers = #tpu.dot_dimension_numbers<[1], [0], [0], [1], [0, 0, 1, 1], [], []>} : vector<8x324xf32>, vector<324x400xf32>, vector<8x400xf32> -> vector<8x400xf32>
    %c0_3 = arith.constant 0 : index
    %c0_4 = arith.constant 0 : index
    %3 = vector.load %arg3[%c0_3, %c0_4] : memref<8x400xf32, #tpu.memory_space<vmem>>, vector<8x400xf32>
    tpu.vector_store %arg3[%c0_3, %c0_4], %2 {strides = array<i32>} : memref<8x400xf32, #tpu.memory_space<vmem>>, vector<8x400xf32>,
    return
  }
  func.func @transform_0(%arg0: i32) -> (i32, i32) {
    %c0_i32 = arith.constant 0 : i32
    %c0_i32_0 = arith.constant 0 : i32
    %c0_i32_1 = arith.constant 0 : i32
    return %c0_i32, %c0_i32_0 : i32, i32
  }
  func.func @transform_1(%arg0: i32) -> (i32, i32) {
    %c0_i32 = arith.constant 0 : i32
    %c0_i32_0 = arith.constant 0 : i32
    return %arg0, %c0_i32 : i32, i32
  }
  func.func @transform_2(%arg0: i32) -> (i32, i32) {
    %c0_i32 = arith.constant 0 : i32
    %c0_i32_0 = arith.constant 0 : i32
    return %arg0, %c0_i32 : i32, i32
  }
}

module attributes {stable_mosaic.version = 11 : i64} {
  func.func @_resize_kron_kernel(%arg0: i32, %arg1: memref<324x400xf32, #tpu.memory_space<vmem>>, %arg2: memref<8x324xf32, #tpu.memory_space<vmem>>, %arg3: memref<8x400xf32, #tpu.memory_space<vmem>>) attributes {dimension_semantics = [#tpu.dimension_semantics<parallel>], iteration_bounds = array<i64: 1>, scalar_prefetch = 0 : i64, scratch_operands = 0 : i64, tpu.core_type = #tpu.core_type<tc>, window_params = [{pipeline_mode = #tpu.pipeline_mode<synchronous>, transform_indices = @transform_0, window_bounds = array<i64: 324, 400>}, {transform_indices = @transform_1, window_bounds = array<i64: 8, 324>}, {transform_indices = @transform_2, window_bounds = array<i64: 8, 400>}]} {
    %c0 = arith.constant 0 : index
    %c0_0 = arith.constant 0 : index
    %0 = vector.load %arg2[%c0, %c0_0] : memref<8x324xf32, #tpu.memory_space<vmem>>, vector<8x324xf32>
    %c0_1 = arith.constant 0 : index
    %c0_2 = arith.constant 0 : index
    %1 = vector.load %arg1[%c0_1, %c0_2] : memref<324x400xf32, #tpu.memory_space<vmem>>, vector<324x400xf32>
    %cst = arith.constant dense<0.000000e+00> : vector<8x400xf32>
    %2 = tpu.matmul %0, %1, %cst {dimension_numbers = #tpu.dot_dimension_numbers<[1], [0], [0], [1], [0, 0, 1, 1], [], []>} : vector<8x324xf32>, vector<324x400xf32>, vector<8x400xf32> -> vector<8x400xf32>
    %c0_3 = arith.constant 0 : index
    %c0_4 = arith.constant 0 : index
    %3 = vector.load %arg3[%c0_3, %c0_4] : memref<8x400xf32, #tpu.memory_space<vmem>>, vector<8x400xf32>
    tpu.vector_store %arg3[%c0_3, %c0_4], %2 {strides = array<i32>} : memref<8x400xf32, #tpu.memory_space<vmem>>, vector<8x400xf32>,
    return
  }
  func.func @transform_0(%arg0: i32) -> (i32, i32) {
    %c0_i32 = arith.constant 0 : i32
    %c0_i32_0 = arith.constant 0 : i32
    %c0_i32_1 = arith.constant 0 : i32
    return %c0_i32, %c0_i32_0 : i32, i32
  }
  func.func @transform_1(%arg0: i32) -> (i32, i32) {
    %c0_i32 = arith.constant 0 : i32
    %c0_i32_0 = arith.constant 0 : i32
    return %arg0, %c0_i32 : i32, i32
  }
  func.func @transform_2(%arg0: i32) -> (i32, i32) {
    %c0_i32 = arith.constant 0 : i32
    %c0_i32_0 = arith.constant 0 : i32
    return %arg0, %c0_i32 : i32, i32
  }
}

</mosaic_0001>

<bundles_post_ra>
// kernel: tpu_custom_call.1
= control target key start
LH: loop header
LB: loop body
LE: loop exit
PB: predicated region body
PF: predicated region fallthrough
CT: control target
= control target key end

     0   :  { %vm183_vm0 = vcmask 1043456   ;;  %vm179_vm1 = vcmask 556032   ;;  %s1038_s0 = inlined_call_operand.vmem [shape: f32[324,400], index: 0, kind: input, shape index: {}]   ;;  %s1039_s1 = inlined_call_operand.vmem [shape: f32[8,324], index: 1, kind: input, shape index: {}]   ;;  %s1040_s2 = inlined_call_operand.hbm [shape: f32[8,400], index: 2, kind: output, shape index: {}]  }
   0x1   :  { %v139_v0 = vld [vmem:[%s1038_s0 + $0x3e0] sm:$0xff]  ;;  %v76_v5 = vld [vmem:[%s1038_s0 + $0x1e8] sm:$0xff]  ;;  %v77_v57 = vld [vmem:[%s1038_s0 + $0x1f0] sm:$0xff] }
   0x2   :  { %v135_v1 = vld [vmem:[%s1038_s0 + $0x3c0] sm:$0xff]  ;;  %216 = vmatpush.msra.mxu1 %v139_v0  ;;  %256 = vmatpush.msra.mxu3 %v76_v5  ;;  %v72_v7 = vld [vmem:[%s1038_s0 + $0x1c8] sm:$0xff]  ;;  %v73_v61 = vld [vmem:[%s1038_s0 + $0x1d0] sm:$0xff] }
   0x3   :  { %v175_v2 = vld [vmem:[%s1038_s0 + $0x500] sm:$0xf]  ;;  %v68_v9 = vld [vmem:[%s1038_s0 + $0x1a8] sm:$0xff]  ;;  %v141_v0 = vld [vmem:[%s1038_s0 + $0x3f0] sm:$0xff] }
   0x4   :  { %v131_v3 = vld [vmem:[%s1038_s0 + $0x3a0] sm:$0xff]  ;;  %457 = vmatpush.msk.msra.mxu2 %vm183_vm0, %v175_v2  ;;  %217 = vmatpush.msra.mxu1 %v135_v1  ;;  %v64_v12 = vld [vmem:[%s1038_s0 + $0x188] sm:$0xff]  ;;  %v69_v1 = vld [vmem:[%s1038_s0 + $0x1b0] sm:$0xff] }
   0x5   :  { %v171_v4 = vld [vmem:[%s1038_s0 + $0x4e0] sm:$0xff]  ;;  %257 = vmatpush.msra.mxu3 %v72_v7  ;;  %v60_v15 = vld [vmem:[%s1038_s0 + $0x168] sm:$0xff]  ;;  %v65_v5 = vld [vmem:[%s1038_s0 + $0x190] sm:$0xff] }
   0x6   :  { %v167_v6 = vld [vmem:[%s1038_s0 + $0x4c0] sm:$0xff]  ;;  %244 = vmatpush.msra.mxu2 %v171_v4  ;;  %218 = vmatpush.msra.mxu1 %v131_v3  ;;  %v56_v20 = vld [vmem:[%s1038_s0 + $0x148] sm:$0xff]  ;;  %v137_v4 = vld [vmem:[%s1038_s0 + $0x3d0] sm:$0xff] }
   0x7   :  { %v127_v8 = vld [vmem:[%s1038_s0 + $0x380] sm:$0xff]  ;;  %258 = vmatpush.msra.mxu3 %v68_v9  ;;  %v52_v24 = vld [vmem:[%s1038_s0 + $0x128] sm:$0xff]  ;;  %v61_v9 = vld [vmem:[%s1038_s0 + $0x170] sm:$0xff] }
   0x8   :  { %v163_v10 = vld [vmem:[%s1038_s0 + $0x4a0] sm:$0xff]  ;;  %245 = vmatpush.msra.mxu2 %v167_v6  ;;  %219 = vmatpush.msra.mxu1 %v127_v8  ;;  %v48_v28 = vld [vmem:[%s1038_s0 + $0x108] sm:$0xff]  ;;  %v133_v8 = vld [vmem:[%s1038_s0 + $0x3b0] sm:$0xff] }
   0x9   :  { %v123_v11 = vld [vmem:[%s1038_s0 + $0x360] sm:$0xff]  ;;  %259 = vmatpush.msra.mxu3 %v64_v12  ;;  %v140_v32 = vld [vmem:[%s1038_s0 + $0x3e8] sm:$0xff]  ;;  %v129_v12 = vld [vmem:[%s1038_s0 + $0x390] sm:$0xff] }
   0xa   :  { %v159_v13 = vld [vmem:[%s1038_s0 + $0x480] sm:$0xff]  ;;  %246 = vmatpush.msra.mxu2 %v163_v10  ;;  %220 = vmatpush.msra.mxu1 %v123_v11  ;;  %v44_v33 = vld [vmem:[%s1038_s0 + $0xe8] sm:$0xff] }
   0xb   :  { %v119_v14 = vld [vmem:[%s1038_s0 + $0x340] sm:$0xff]  ;;  %260 = vmatpush.msra.mxu3 %v60_v15  ;;  %v136_v36 = vld [vmem:[%s1038_s0 + $0x3c8] sm:$0xff] }
   0xc   :  { %v75_v16 = vld [vmem:[%s1038_s0 + $0x1e0] sm:$0xff]  ;;  %247 = vmatpush.msra.mxu2 %v159_v13  ;;  %221 = vmatpush.msra.mxu1 %v119_v14  ;;  %v40_v37 = vld [vmem:[%s1038_s0 + $0xc8] sm:$0xff]  ;;  %v57_v13 = vld [vmem:[%s1038_s0 + $0x150] sm:$0xff] }
   0xd   :  { %v155_v17 = vld [vmem:[%s1038_s0 + $0x460] sm:$0xff]  ;;  %196 = vmatpush.msra.mxu0 %v75_v16  ;;  %261 = vmatpush.msra.mxu3 %v56_v20  ;;  %v132_v40 = vld [vmem:[%s1038_s0 + $0x3a8] sm:$0xff]  ;;  %v125_v16 = vld [vmem:[%s1038_s0 + $0x370] sm:$0xff] }
   0xe   :  { %v71_v18 = vld [vmem:[%s1038_s0 + $0x1c0] sm:$0xff]  ;;  %248 = vmatpush.msra.mxu2 %v155_v17  ;;  %v36_v41 = vld [vmem:[%s1038_s0 + $0xa8] sm:$0xff]  ;;  %v53_v17 = vld [vmem:[%s1038_s0 + $0x130] sm:$0xff] }
   0xf   :  { %v115_v19 = vld [vmem:[%s1038_s0 + $0x320] sm:$0xff]  ;;  %197 = vmatpush.msra.mxu0 %v71_v18  ;;  %262 = vmatpush.msra.mxu3 %v52_v24  ;;  %v128_v44 = vld [vmem:[%s1038_s0 + $0x388] sm:$0xff]  ;;  %v121_v20 = vld [vmem:[%s1038_s0 + $0x350] sm:$0xff] }
  0x10   :  { %v151_v21 = vld [vmem:[%s1038_s0 + $0x440] sm:$0xff]  ;;  %222 = vmatpush.msra.mxu1 %v115_v19  ;;  %v32_v45 = vld [vmem:[%s1038_s0 + $0x88] sm:$0xff]  ;;  %v117_v24 = vld [vmem:[%s1038_s0 + $0x330] sm:$0xff] }
  0x11   :  { %v67_v22 = vld [vmem:[%s1038_s0 + $0x1a0] sm:$0xff]  ;;  %249 = vmatpush.msra.mxu2 %v151_v21  ;;  %263 = vmatpush.msra.mxu3 %v48_v28  ;;  %v124_v48 = vld [vmem:[%s1038_s0 + $0x368] sm:$0xff]  ;;  %v49_v21 = vld [vmem:[%s1038_s0 + $0x110] sm:$0xff] }
  0x12   :  { %v111_v23 = vld [vmem:[%s1038_s0 + $0x300] sm:$0xff]  ;;  %198 = vmatpush.msra.mxu0 %v67_v22  ;;  %v28_v49 = vld [vmem:[%s1038_s0 + $0x68] sm:$0xff]  ;;  %v113_v28 = vld [vmem:[%s1038_s0 + $0x310] sm:$0xff] }
  0x13   :  { %v147_v25 = vld [vmem:[%s1038_s0 + $0x420] sm:$0xff]  ;;  %223 = vmatpush.msra.mxu1 %v111_v23  ;;  %264 = vmatpush.msra.mxu3 %v44_v33  ;;  %v120_v52 = vld [vmem:[%s1038_s0 + $0x348] sm:$0xff]  ;;  %v37_v33 = vld [vmem:[%s1038_s0 + $0xb0] sm:$0xff] }
  0x14   :  { %v63_v26 = vld [vmem:[%s1038_s0 + $0x180] sm:$0xff]  ;;  %250 = vmatpush.msra.mxu2 %v147_v25  ;;  %v24_v53 = vld [vmem:[%s1038_s0 + $0x48] sm:$0xff]  ;;  %v45_v25 = vld [vmem:[%s1038_s0 + $0xf0] sm:$0xff] }
  0x15   :  { %v107_v27 = vld [vmem:[%s1038_s0 + $0x2e0] sm:$0xff]  ;;  %199 = vmatpush.msra.mxu0 %v63_v26  ;;  %265 = vmatpush.msra.mxu3 %v40_v37  ;;  %v116_v56 = vld [vmem:[%s1038_s0 + $0x328] sm:$0xff]  ;;  %v783_v26 = vld [vmem:[%s1039_s1 + $0x10] sm:$0xff] }
  0x16   :  { %v143_v29 = vld [vmem:[%s1038_s0 + $0x400] sm:$0xff]  ;;  %224 = vmatpush.msra.mxu1 %v107_v27  ;;  %v20_v58 = vld [vmem:[%s1038_s0 + $0x28] sm:$0xff]  ;;  %v33_v37 = vld [vmem:[%s1038_s0 + $0x90] sm:$0xff] }
  0x17   :  { %v59_v30 = vld [vmem:[%s1038_s0 + $0x160] sm:$0xff]  ;;  %251 = vmatpush.msra.mxu2 %v143_v29  ;;  %266 = vmatpush.msra.mxu3 %v36_v41  ;;  %v112_v59 = vld [vmem:[%s1038_s0 + $0x308] sm:$0xff]  ;;  %v41_v29 = vld [vmem:[%s1038_s0 + $0xd0] sm:$0xff] }
  0x18   :  { %v103_v31 = vld [vmem:[%s1038_s0 + $0x2c0] sm:$0xff]  ;;  %200 = vmatpush.msra.mxu0 %v59_v30  ;;  %v16_v62 = vld [vmem:[%s1038_s0 + $0x8] sm:$0xff]  ;;  %v78_v30 = vld [vmem:[%s1038_s0 + $0x1f8] sm:$0xff]  ;;  %458 = vmatmul.msk.f32.vlgmr.msra.gmra.mxu2 %vm179_vm1, %v783_v26 }
  0x19   :  { %v55_v34 = vld [vmem:[%s1038_s0 + $0x140] sm:$0xff]  ;;  %225 = vmatpush.msra.mxu1 %v103_v31  ;;  %276 = vmatpush.msrb.mxu2 %v140_v32  ;;  %v108_v63 = vld [vmem:[%s1038_s0 + $0x2e8] sm:$0xff]  ;;  %v109_v32 = vld [vmem:[%s1038_s0 + $0x2f0] sm:$0xff] }
  0x1a   :  { %v99_v35 = vld [vmem:[%s1038_s0 + $0x2a0] sm:$0xff]  ;;  %201 = vmatpush.msra.mxu0 %v55_v34  ;;  %267 = vmatpush.msra.mxu3 %v32_v45  ;;  %v104_v3 = vld [vmem:[%s1038_s0 + $0x2c8] sm:$0xff]  ;;  %v74_v34 = vld [vmem:[%s1038_s0 + $0x1d8] sm:$0xff] }
  0x1b   :  { %v51_v38 = vld [vmem:[%s1038_s0 + $0x120] sm:$0xff]  ;;  %226 = vmatpush.msra.mxu1 %v99_v35  ;;  %277 = vmatpush.msrb.mxu2 %v136_v36  ;;  %v100_v7 = vld [vmem:[%s1038_s0 + $0x2a8] sm:$0xff]  ;;  %v105_v36 = vld [vmem:[%s1038_s0 + $0x2d0] sm:$0xff] }
  0x1c   :  { %v95_v39 = vld [vmem:[%s1038_s0 + $0x280] sm:$0xff]  ;;  %202 = vmatpush.msra.mxu0 %v51_v38  ;;  %268 = vmatpush.msra.mxu3 %v28_v49  ;;  %v96_v11 = vld [vmem:[%s1038_s0 + $0x288] sm:$0xff]  ;;  %v29_v41 = vld [vmem:[%s1038_s0 + $0x70] sm:$0xff] }
  0x1d   :  { %v47_v42 = vld [vmem:[%s1038_s0 + $0x100] sm:$0xff]  ;;  %227 = vmatpush.msra.mxu1 %v95_v39  ;;  %278 = vmatpush.msrb.mxu2 %v132_v40  ;;  %v92_v15 = vld [vmem:[%s1038_s0 + $0x268] sm:$0xff]  ;;  %v70_v40 = vld [vmem:[%s1038_s0 + $0x1b8] sm:$0xff] }
  0x1e   :  { %v91_v43 = vld [vmem:[%s1038_s0 + $0x260] sm:$0xff]  ;;  %203 = vmatpush.msra.mxu0 %v47_v42  ;;  %269 = vmatpush.msra.mxu3 %v24_v53  ;;  %v176_v18 = vld [vmem:[%s1038_s0 + $0x508] sm:$0xf] }
  0x1f   :  { %v43_v46 = vld [vmem:[%s1038_s0 + $0xe0] sm:$0xff]  ;;  %228 = vmatpush.msra.mxu1 %v91_v43  ;;  %279 = vmatpush.msrb.mxu2 %v128_v44  ;;  %v88_v19 = vld [vmem:[%s1038_s0 + $0x248] sm:$0xff] }
  0x20   :  { %v87_v47 = vld [vmem:[%s1038_s0 + $0x240] sm:$0xff]  ;;  %204 = vmatpush.msra.mxu0 %v43_v46  ;;  %270 = vmatpush.msra.mxu3 %v20_v58  ;;  %v172_v22 = vld [vmem:[%s1038_s0 + $0x4e8] sm:$0xff] }
  0x21   :  { %v39_v50 = vld [vmem:[%s1038_s0 + $0xc0] sm:$0xff]  ;;  %229 = vmatpush.msra.mxu1 %v87_v47  ;;  %280 = vmatpush.msrb.mxu2 %v124_v48  ;;  %v84_v23 = vld [vmem:[%s1038_s0 + $0x228] sm:$0xff] }
  0x22   :  { %v83_v51 = vld [vmem:[%s1038_s0 + $0x220] sm:$0xff]  ;;  %205 = vmatpush.msra.mxu0 %v39_v50  ;;  %271 = vmatpush.msra.mxu3 %v16_v62  ;;  %v80_v27 = vld [vmem:[%s1038_s0 + $0x208] sm:$0xff] }
  0x23   :  { %v35_v54 = vld [vmem:[%s1038_s0 + $0xa0] sm:$0xff]  ;;  %230 = vmatpush.msra.mxu1 %v83_v51  ;;  %281 = vmatpush.msrb.mxu2 %v120_v52  ;;  %v168_v31 = vld [vmem:[%s1038_s0 + $0x4c8] sm:$0xff] }
  0x24   :  { %v79_v55 = vld [vmem:[%s1038_s0 + $0x200] sm:$0xff]  ;;  %206 = vmatpush.msra.mxu0 %v35_v54  ;;  %336 = vmatpush.msrb.mxu3 %v141_v0  ;;  %v164_v35 = vld [vmem:[%s1038_s0 + $0x4a8] sm:$0xff] }
  0x25   :  { %v31_v60 = vld [vmem:[%s1038_s0 + $0x80] sm:$0xff]  ;;  %231 = vmatpush.msra.mxu1 %v79_v55  ;;  %282 = vmatpush.msrb.mxu2 %v116_v56  ;;  %v828_v39 = vld [vmem:[%s1039_s1 + $0x8] sm:$0xff] }
  0x26   :  { %207 = vmatpush.msra.mxu0 %v31_v60  ;;  %v27_v2 = vld [vmem:[%s1038_s0 + $0x60] sm:$0xff]  ;;  %337 = vmatpush.msrb.mxu3 %v137_v4  ;;  %v160_v42 = vld [vmem:[%s1038_s0 + $0x488] sm:$0xff] }
  0x27   :  { %316 = vmatpush.msrb.mxu1 %v77_v57  ;;  %283 = vmatpush.msrb.mxu2 %v112_v59  ;;  %v23_v6 = vld [vmem:[%s1038_s0 + $0x40] sm:$0xff] }
  0x28   :  { %208 = vmatpush.msra.mxu0 %v27_v2  ;;  %v19_v10 = vld [vmem:[%s1038_s0 + $0x20] sm:$0xff]  ;;  %338 = vmatpush.msrb.mxu3 %v133_v8 }
  0x29   :  { %317 = vmatpush.msrb.mxu1 %v73_v61  ;;  %284 = vmatpush.msrb.mxu2 %v108_v63  ;;  %v15_v14 = vld [vmem:[%s1038_s0] sm:$0xff] }
  0x2a   :  { %209 = vmatpush.msra.mxu0 %v23_v6  ;;  %339 = vmatpush.msrb.mxu3 %v129_v12  ;;  %v823_v38 = vld [vmem:[%s1039_s1] sm:$0xff] }
  0x2b   :  { %318 = vmatpush.msrb.mxu1 %v69_v1  ;;  %285 = vmatpush.msrb.mxu2 %v104_v3 }
  0x2c   :  { %210 = vmatpush.msra.mxu0 %v19_v10  ;;  %340 = vmatpush.msrb.mxu3 %v125_v16 }
  0x2d   :  { %319 = vmatpush.msrb.mxu1 %v65_v5  ;;  %286 = vmatpush.msrb.mxu2 %v100_v7 }
  0x2e   :  { %211 = vmatpush.msra.mxu0 %v15_v14  ;;  %341 = vmatpush.msrb.mxu3 %v121_v20 }
  0x2f   :  { %320 = vmatpush.msrb.mxu1 %v61_v9  ;;  %287 = vmatpush.msrb.mxu2 %v96_v11 }
  0x30   :  { %459 = vmatpush.msk.msrb.mxu0 %vm183_vm0, %v176_v18  ;;  %342 = vmatpush.msrb.mxu3 %v117_v24 }
  0x31   :  { %321 = vmatpush.msrb.mxu1 %v57_v13  ;;  %288 = vmatpush.msrb.mxu2 %v92_v15 }
  0x32   :  { %304 = vmatpush.msrb.mxu0 %v172_v22  ;;  %343 = vmatpush.msrb.mxu3 %v113_v28 }
  0x33   :  { %322 = vmatpush.msrb.mxu1 %v53_v17  ;;  %289 = vmatpush.msrb.mxu2 %v88_v19 }
  0x34   :  { %305 = vmatpush.msrb.mxu0 %v168_v31  ;;  %344 = vmatpush.msrb.mxu3 %v109_v32 }
  0x35   :  { %323 = vmatpush.msrb.mxu1 %v49_v21  ;;  %290 = vmatpush.msrb.mxu2 %v84_v23 }
  0x36   :  { %306 = vmatpush.msrb.mxu0 %v164_v35  ;;  %345 = vmatpush.msrb.mxu3 %v105_v36 }
  0x37   :  { %324 = vmatpush.msrb.mxu1 %v45_v25  ;;  %291 = vmatpush.msrb.mxu2 %v80_v27 }
  0x39   :  { %325 = vmatpush.msrb.mxu1 %v41_v29  ;;  %376 = vmatpush.msra.mxu2 %v78_v30 }
  0x3b   :  { %326 = vmatpush.msrb.mxu1 %v37_v33  ;;  %377 = vmatpush.msra.mxu2 %v74_v34 }
  0x3c   :  { %7 = vsyncpa [#allocation3], 0  ;;  %212 = vmatmul.f32.vlgmr.msra.gmra.mxu0 %v823_v38  ;;  %v101_v43 = vld [vmem:[%s1038_s0 + $0x2b0] sm:$0xff]  ;;  %v66_v44 = vld [vmem:[%s1038_s0 + $0x198] sm:$0xff]  ;;  %232 = vmatmul.f32.vlgmr.msra.gmra.mxu1 %v828_v39  ;;  %s448_s5 = sshll.u32 %s1040_s2, 4  ;;  %vm439_vm2 = vcmask 130048   ;;  %s449_s5 = int_to_ptr.hbm [resolvable:$true] %s448_s5 }
  0x3d   :  { %327 = vmatpush.msrb.mxu1 %v33_v37  ;;  %v25_v45 = vld [vmem:[%s1038_s0 + $0x50] sm:$0xff]  ;;  %378 = vmatpush.msra.mxu2 %v70_v40  ;;  %v156_v46 = vld [vmem:[%s1038_s0 + $0x468] sm:$0xff]  ;;  %v62_v48 = vld [vmem:[%s1038_s0 + $0x178] sm:$0xff] }
  0x3e   :  { %307 = vmatpush.msrb.mxu0 %v160_v42  ;;  %v97_v47 = vld [vmem:[%s1038_s0 + $0x290] sm:$0xff]  ;;  %346 = vmatpush.msrb.mxu3 %v101_v43  ;;  %v152_v50 = vld [vmem:[%s1038_s0 + $0x448] sm:$0xff]  ;;  %v58_v52 = vld [vmem:[%s1038_s0 + $0x158] sm:$0xff] }
  0x3f   :  { %328 = vmatpush.msrb.mxu1 %v29_v41  ;;  %v21_v49 = vld [vmem:[%s1038_s0 + $0x30] sm:$0xff]  ;;  %379 = vmatpush.msra.mxu2 %v66_v44  ;;  %v148_v54 = vld [vmem:[%s1038_s0 + $0x428] sm:$0xff]  ;;  %v142_v55 = vld [vmem:[%s1038_s0 + $0x3f8] sm:$0xff] }
  0x40   :  { %308 = vmatpush.msrb.mxu0 %v156_v46  ;;  %v93_v51 = vld [vmem:[%s1038_s0 + $0x270] sm:$0xff]  ;;  %347 = vmatpush.msrb.mxu3 %v97_v47  ;;  %v54_v57 = vld [vmem:[%s1038_s0 + $0x138] sm:$0xff]  ;;  %v144_v58 = vld [vmem:[%s1038_s0 + $0x408] sm:$0xff] }
  0x41   :  { %329 = vmatpush.msrb.mxu1 %v25_v45  ;;  %v17_v53 = vld [vmem:[%s1038_s0 + $0x10] sm:$0xff]  ;;  %380 = vmatpush.msra.mxu2 %v62_v48  ;;  %v138_v59 = vld [vmem:[%s1038_s0 + $0x3d8] sm:$0xff] }
  0x42   :  { %309 = vmatpush.msrb.mxu0 %v152_v50  ;;  %v89_v56 = vld [vmem:[%s1038_s0 + $0x250] sm:$0xff]  ;;  %348 = vmatpush.msrb.mxu3 %v93_v51  ;;  %v50_v62 = vld [vmem:[%s1038_s0 + $0x118] sm:$0xff] }
  0x43   :  { %330 = vmatpush.msrb.mxu1 %v21_v49  ;;  %381 = vmatpush.msra.mxu2 %v58_v52  ;;  %v85_v60 = vld [vmem:[%s1038_s0 + $0x230] sm:$0xff]  ;;  %v134_v63 = vld [vmem:[%s1038_s0 + $0x3b8] sm:$0xff] }
  0x44   :  { %310 = vmatpush.msrb.mxu0 %v148_v54  ;;  %349 = vmatpush.msrb.mxu3 %v89_v56  ;;  %v177_v61 = vld [vmem:[%s1038_s0 + $0x510] sm:$0xf]  ;;  %v130_v1 = vld [vmem:[%s1038_s0 + $0x398] sm:$0xff] }
  0x45   :  { %331 = vmatpush.msrb.mxu1 %v17_v53  ;;  %382 = vmatpush.msra.mxu2 %v54_v57  ;;  %v81_v0 = vld [vmem:[%s1038_s0 + $0x210] sm:$0xff]  ;;  %v46_v3 = vld [vmem:[%s1038_s0 + $0xf8] sm:$0xff] }
  0x46   :  { %311 = vmatpush.msrb.mxu0 %v144_v58  ;;  %350 = vmatpush.msrb.mxu3 %v85_v60  ;;  %v173_v2 = vld [vmem:[%s1038_s0 + $0x4f0] sm:$0xff]  ;;  %v178_v4 = vld [vmem:[%s1038_s0 + $0x518] sm:$0xf] }
  0x47   :  { %396 = vmatpush.msra.mxu1 %v142_v55  ;;  %383 = vmatpush.msra.mxu2 %v50_v62  ;;  %v126_v5 = vld [vmem:[%s1038_s0 + $0x378] sm:$0xff]  ;;  %v169_v6 = vld [vmem:[%s1038_s0 + $0x4d0] sm:$0xff] }
  0x48   :  { %461 = vmatpush.msk.msra.mxu0 %vm183_vm0, %v177_v61  ;;  %272 = vmatmul.f32.vlgmr.msra.gmra.mxu3 %v823_v38  ;;  %v42_v7 = vld [vmem:[%s1038_s0 + $0xd8] sm:$0xff]  ;;  %v165_v10 = vld [vmem:[%s1038_s0 + $0x4b0] sm:$0xff] }
  0x49   :  { %397 = vmatpush.msra.mxu1 %v138_v59  ;;  %351 = vmatpush.msrb.mxu3 %v81_v0  ;;  %v174_v8 = vld [vmem:[%s1038_s0 + $0x4f8] sm:$0xff]  ;;  %v161_v14 = vld [vmem:[%s1038_s0 + $0x490] sm:$0xff] }
  0x4a   :  { %292 = vmatmul.f32.vlgmr.msrb.gmra.mxu2 %v828_v39  ;;  %364 = vmatpush.msra.mxu0 %v173_v2  ;;  %v122_v9 = vld [vmem:[%s1038_s0 + $0x358] sm:$0xff]  ;;  %v157_v18 = vld [vmem:[%s1038_s0 + $0x470] sm:$0xff] }
  0x4b   :  { %398 = vmatpush.msra.mxu1 %v134_v63  ;;  %384 = vmatpush.msra.mxu2 %v46_v3  ;;  %v38_v11 = vld [vmem:[%s1038_s0 + $0xb8] sm:$0xff]  ;;  %v153_v22 = vld [vmem:[%s1038_s0 + $0x450] sm:$0xff] }
  0x4c   :  { %463 = vmatpush.msk.msra.mxu3 %vm183_vm0, %v178_v4  ;;  %365 = vmatpush.msra.mxu0 %v169_v6  ;;  %v170_v12 = vld [vmem:[%s1038_s0 + $0x4d8] sm:$0xff]  ;;  %v149_v27 = vld [vmem:[%s1038_s0 + $0x430] sm:$0xff] }
  0x4d   :  { %399 = vmatpush.msra.mxu1 %v130_v1  ;;  %385 = vmatpush.msra.mxu2 %v42_v7  ;;  %v118_v13 = vld [vmem:[%s1038_s0 + $0x338] sm:$0xff]  ;;  %v145_v32 = vld [vmem:[%s1038_s0 + $0x410] sm:$0xff] }
  0x4e   :  { %424 = vmatpush.msra.mxu3 %v174_v8  ;;  %366 = vmatpush.msra.mxu0 %v165_v10  ;;  %v34_v15 = vld [vmem:[%s1038_s0 + $0x98] sm:$0xff] }
  0x4f   :  { %400 = vmatpush.msra.mxu1 %v126_v5  ;;  %v166_v16 = vld [vmem:[%s1038_s0 + $0x4b8] sm:$0xff]  ;;  %386 = vmatpush.msra.mxu2 %v38_v11 }
  0x50   :  { %v114_v17 = vld [vmem:[%s1038_s0 + $0x318] sm:$0xff]  ;;  %425 = vmatpush.msra.mxu3 %v170_v12  ;;  %367 = vmatpush.msra.mxu0 %v161_v14 }
  0x51   :  { %401 = vmatpush.msra.mxu1 %v122_v9  ;;  %387 = vmatpush.msra.mxu2 %v34_v15  ;;  %v110_v19 = vld [vmem:[%s1038_s0 + $0x2f8] sm:$0xff] }
  0x52   :  { %426 = vmatpush.msra.mxu3 %v166_v16  ;;  %v30_v20 = vld [vmem:[%s1038_s0 + $0x78] sm:$0xff]  ;;  %460 = vmatmul.msk.f32.vlgmr.msrb.gmra.mxu0 %vm179_vm1, %v783_v26 }
  0x53   :  { %402 = vmatpush.msra.mxu1 %v118_v13  ;;  %v162_v21 = vld [vmem:[%s1038_s0 + $0x498] sm:$0xff]  ;;  %352 = vmatmul.f32.vlgmr.msrb.gmra.mxu3 %v828_v39 }
  0x54   :  { %368 = vmatpush.msra.mxu0 %v157_v18  ;;  %v106_v23 = vld [vmem:[%s1038_s0 + $0x2d8] sm:$0xff]  ;;  %388 = vmatpush.msra.mxu2 %v30_v20 }
  0x55   :  { %403 = vmatpush.msra.mxu1 %v114_v17  ;;  %v26_v24 = vld [vmem:[%s1038_s0 + $0x58] sm:$0xff]  ;;  %427 = vmatpush.msra.mxu3 %v162_v21 }
  0x56   :  { %v158_v25 = vld [vmem:[%s1038_s0 + $0x478] sm:$0xff]  ;;  %369 = vmatpush.msra.mxu0 %v153_v22  ;;  %389 = vmatpush.msra.mxu2 %v26_v24 }
  0x57   :  { %404 = vmatpush.msra.mxu1 %v110_v19  ;;  %v102_v28 = vld [vmem:[%s1038_s0 + $0x2b8] sm:$0xff]  ;;  %428 = vmatpush.msra.mxu3 %v158_v25 }
  0x58   :  { %v22_v29 = vld [vmem:[%s1038_s0 + $0x38] sm:$0xff]  ;;  %370 = vmatpush.msra.mxu0 %v149_v27  ;;  %332 = vmatmul.f32.vlgmr.msrb.gmra.mxu1 %v823_v38 }
  0x59   :  { %405 = vmatpush.msra.mxu1 %v106_v23  ;;  %v154_v30 = vld [vmem:[%s1038_s0 + $0x458] sm:$0xff]  ;;  %390 = vmatpush.msra.mxu2 %v22_v29 }
  0x5a   :  { %v98_v31 = vld [vmem:[%s1038_s0 + $0x298] sm:$0xff]  ;;  %429 = vmatpush.msra.mxu3 %v154_v30  ;;  %371 = vmatpush.msra.mxu0 %v145_v32 }
  0x5b   :  { %406 = vmatpush.msra.mxu1 %v102_v28  ;;  %v18_v33 = vld [vmem:[%s1038_s0 + $0x18] sm:$0xff]  ;;  %462 = vmatmul.msk.f32.vlgmr.msra.gmra.mxu0 %vm179_vm1, %v783_v26 }
  0x5c   :  { %v150_v34 = vld [vmem:[%s1038_s0 + $0x438] sm:$0xff]  ;;  %391 = vmatpush.msra.mxu2 %v18_v33 }
  0x5d   :  { %v94_v35 = vld [vmem:[%s1038_s0 + $0x278] sm:$0xff]  ;;  %407 = vmatpush.msra.mxu1 %v98_v31  ;;  %430 = vmatpush.msra.mxu3 %v150_v34 }
  0x5e   :  { %v146_v36 = vld [vmem:[%s1038_s0 + $0x418] sm:$0xff]  ;;  %392 = vmatmul.f32.vlgmr.msra.gmra.mxu2 %v823_v38 }
  0x5f   :  { %v90_v37 = vld [vmem:[%s1038_s0 + $0x258] sm:$0xff]  ;;  %408 = vmatpush.msra.mxu1 %v94_v35  ;;  %431 = vmatpush.msra.mxu3 %v146_v36 }
  0x60   :  { %v86_v40 = vld [vmem:[%s1038_s0 + $0x238] sm:$0xff]  ;;  %464 = vmatmul.msk.f32.vlgmr.msra.gmra.mxu3 %vm179_vm1, %v783_v26 }
  0x61   :  { %409 = vmatpush.msra.mxu1 %v90_v37  ;;  %v82_v41 = vld [vmem:[%s1038_s0 + $0x218] sm:$0xff]  ;;  %s492_s0 = smov [#allocation2]  }
  0x62   :  { %s446_s30 = sshll.u32 %s492_s0, 4  ;;  %s447_s30 = int_to_ptr.vmem [resolvable:$true] %s446_s30 }
  0x63   :  { %410 = vmatpush.msra.mxu1 %v86_v40 }
  0x65   :  { %411 = vmatpush.msra.mxu1 %v82_v41 }
  0x66   :  { %412 = vmatmul.f32.vlgmr.msra.gmra.mxu1 %v828_v39 }
  0x9b   :  { %v253_v38 = vpop.f32.mrf.mxu2 }
  0xb9   :  { %v213_v42 = vpop.f32.mrf.mxu0  ;;  %v233_v43 = vpop.f32.mrf.mxu1 }
  0xba   :  { %v234_v44 = vadd.f32 %v233_v43, %v213_v42 }
  0xbc   :  { %v254_v45 = vadd.f32 %v253_v38, %v234_v44 }
  0xbe   :  { %436 = vst [vmem:[#allocation2] sm:$0xff] %v254_v45 }
  0xcb   :  { %v273_v46 = vpop.f32.mrf.mxu3 }
  0xcd   :  { %v293_v47 = vpop.f32.mrf.mxu2 }
  0xce   :  { %v294_v48 = vadd.f32 %v293_v47, %v273_v46 }
  0xcf   :  { %v313_v49 = vpop.f32.mrf.mxu0 }
  0xd0   :  { %v314_v50 = vadd.f32 %v313_v49, %v294_v48 }
  0xd2   :  { %437 = vst [vmem:[#allocation2 + $0x8] sm:$0xff] %v314_v50 }
  0xd5   :  { %v333_v26 = vpop.f32.mrf.mxu1 }
  0xd6   :  { %v353_v51 = vpop.f32.mrf.mxu3 }
  0xd7   :  { %v354_v52 = vadd.f32 %v353_v51, %v333_v26 }
  0xd8   :  { %v373_v53 = vpop.f32.mrf.mxu0 }
  0xd9   :  { %v374_v54 = vadd.f32 %v373_v53, %v354_v52 }
  0xdb   :  { %438 = vst [vmem:[#allocation2 + $0x10] sm:$0xff] %v374_v54 }
  0xe1   :  { %v393_v55 = vpop.f32.mrf.mxu2 }
  0xe3   :  { %v413_v39 = vpop.f32.mrf.mxu1  ;;  %v433_v57 = vpop.f32.mrf.mxu3 }
  0xe4   :  { %v414_v56 = vadd.f32 %v413_v39, %v393_v55 }
  0xe6   :  { %v434_v58 = vadd.f32 %v433_v57, %v414_v56 }
  0xe8   :  { %440 = vst.msk [vmem:[#allocation2 + $0x18] sm:$0xff] %vm439_vm2, %v434_v58 }
  0xe9   :  { %451 = dma.vmem_to_hbm [thread:$0]  %s447_s30, 512, %s449_s5, [#allocation3]  }
  0xea   :  { %490 = dma.done.wait [#allocation3], 512  }
  0xeb   :  { %491 = vsyncadd [#allocation3], 4294966784 }
  0xec   :  { %456 = vsyncpa [#allocation3], 1 }

// kernel: tpu_custom_call.1
= control target key start
LH: loop header
LB: loop body
LE: loop exit
PB: predicated region body
PF: predicated region fallthrough
CT: control target
= control target key end

     0   :  { %vm183_vm0 = vcmask 1043456   ;;  %vm179_vm1 = vcmask 556032   ;;  %s1038_s0 = inlined_call_operand.vmem [shape: f32[324,400], index: 0, kind: input, shape index: {}]   ;;  %s1039_s1 = inlined_call_operand.vmem [shape: f32[8,324], index: 1, kind: input, shape index: {}]   ;;  %s1040_s2 = inlined_call_operand.hbm [shape: f32[8,400], index: 2, kind: output, shape index: {}]  }
   0x1   :  { %v139_v0 = vld [vmem:[%s1038_s0 + $0x3e0] sm:$0xff]  ;;  %v76_v5 = vld [vmem:[%s1038_s0 + $0x1e8] sm:$0xff]  ;;  %v77_v57 = vld [vmem:[%s1038_s0 + $0x1f0] sm:$0xff] }
   0x2   :  { %v135_v1 = vld [vmem:[%s1038_s0 + $0x3c0] sm:$0xff]  ;;  %216 = vmatpush.msra.mxu1 %v139_v0  ;;  %256 = vmatpush.msra.mxu3 %v76_v5  ;;  %v72_v7 = vld [vmem:[%s1038_s0 + $0x1c8] sm:$0xff]  ;;  %v73_v61 = vld [vmem:[%s1038_s0 + $0x1d0] sm:$0xff] }
   0x3   :  { %v175_v2 = vld [vmem:[%s1038_s0 + $0x500] sm:$0xf]  ;;  %v68_v9 = vld [vmem:[%s1038_s0 + $0x1a8] sm:$0xff]  ;;  %v141_v0 = vld [vmem:[%s1038_s0 + $0x3f0] sm:$0xff] }
   0x4   :  { %v131_v3 = vld [vmem:[%s1038_s0 + $0x3a0] sm:$0xff]  ;;  %457 = vmatpush.msk.msra.mxu2 %vm183_vm0, %v175_v2  ;;  %217 = vmatpush.msra.mxu1 %v135_v1  ;;  %v64_v12 = vld [vmem:[%s1038_s0 + $0x188] sm:$0xff]  ;;  %v69_v1 = vld [vmem:[%s1038_s0 + $0x1b0] sm:$0xff] }
   0x5   :  { %v171_v4 = vld [vmem:[%s1038_s0 + $0x4e0] sm:$0xff]  ;;  %257 = vmatpush.msra.mxu3 %v72_v7  ;;  %v60_v15 = vld [vmem:[%s1038_s0 + $0x168] sm:$0xff]  ;;  %v65_v5 = vld [vmem:[%s1038_s0 + $0x190] sm:$0xff] }
   0x6   :  { %v167_v6 = vld [vmem:[%s1038_s0 + $0x4c0] sm:$0xff]  ;;  %244 = vmatpush.msra.mxu2 %v171_v4  ;;  %218 = vmatpush.msra.mxu1 %v131_v3  ;;  %v56_v20 = vld [vmem:[%s1038_s0 + $0x148] sm:$0xff]  ;;  %v137_v4 = vld [vmem:[%s1038_s0 + $0x3d0] sm:$0xff] }
   0x7   :  { %v127_v8 = vld [vmem:[%s1038_s0 + $0x380] sm:$0xff]  ;;  %258 = vmatpush.msra.mxu3 %v68_v9  ;;  %v52_v24 = vld [vmem:[%s1038_s0 + $0x128] sm:$0xff]  ;;  %v61_v9 = vld [vmem:[%s1038_s0 + $0x170] sm:$0xff] }
   0x8   :  { %v163_v10 = vld [vmem:[%s1038_s0 + $0x4a0] sm:$0xff]  ;;  %245 = vmatpush.msra.mxu2 %v167_v6  ;;  %219 = vmatpush.msra.mxu1 %v127_v8  ;;  %v48_v28 = vld [vmem:[%s1038_s0 + $0x108] sm:$0xff]  ;;  %v133_v8 = vld [vmem:[%s1038_s0 + $0x3b0] sm:$0xff] }
   0x9   :  { %v123_v11 = vld [vmem:[%s1038_s0 + $0x360] sm:$0xff]  ;;  %259 = vmatpush.msra.mxu3 %v64_v12  ;;  %v140_v32 = vld [vmem:[%s1038_s0 + $0x3e8] sm:$0xff]  ;;  %v129_v12 = vld [vmem:[%s1038_s0 + $0x390] sm:$0xff] }
   0xa   :  { %v159_v13 = vld [vmem:[%s1038_s0 + $0x480] sm:$0xff]  ;;  %246 = vmatpush.msra.mxu2 %v163_v10  ;;  %220 = vmatpush.msra.mxu1 %v123_v11  ;;  %v44_v33 = vld [vmem:[%s1038_s0 + $0xe8] sm:$0xff] }
   0xb   :  { %v119_v14 = vld [vmem:[%s1038_s0 + $0x340] sm:$0xff]  ;;  %260 = vmatpush.msra.mxu3 %v60_v15  ;;  %v136_v36 = vld [vmem:[%s1038_s0 + $0x3c8] sm:$0xff] }
   0xc   :  { %v75_v16 = vld [vmem:[%s1038_s0 + $0x1e0] sm:$0xff]  ;;  %247 = vmatpush.msra.mxu2 %v159_v13  ;;  %221 = vmatpush.msra.mxu1 %v119_v14  ;;  %v40_v37 = vld [vmem:[%s1038_s0 + $0xc8] sm:$0xff]  ;;  %v57_v13 = vld [vmem:[%s1038_s0 + $0x150] sm:$0xff] }
   0xd   :  { %v155_v17 = vld [vmem:[%s1038_s0 + $0x460] sm:$0xff]  ;;  %196 = vmatpush.msra.mxu0 %v75_v16  ;;  %261 = vmatpush.msra.mxu3 %v56_v20  ;;  %v132_v40 = vld [vmem:[%s1038_s0 + $0x3a8] sm:$0xff]  ;;  %v125_v16 = vld [vmem:[%s1038_s0 + $0x370] sm:$0xff] }
   0xe   :  { %v71_v18 = vld [vmem:[%s1038_s0 + $0x1c0] sm:$0xff]  ;;  %248 = vmatpush.msra.mxu2 %v155_v17  ;;  %v36_v41 = vld [vmem:[%s1038_s0 + $0xa8] sm:$0xff]  ;;  %v53_v17 = vld [vmem:[%s1038_s0 + $0x130] sm:$0xff] }
   0xf   :  { %v115_v19 = vld [vmem:[%s1038_s0 + $0x320] sm:$0xff]  ;;  %197 = vmatpush.msra.mxu0 %v71_v18  ;;  %262 = vmatpush.msra.mxu3 %v52_v24  ;;  %v128_v44 = vld [vmem:[%s1038_s0 + $0x388] sm:$0xff]  ;;  %v121_v20 = vld [vmem:[%s1038_s0 + $0x350] sm:$0xff] }
  0x10   :  { %v151_v21 = vld [vmem:[%s1038_s0 + $0x440] sm:$0xff]  ;;  %222 = vmatpush.msra.mxu1 %v115_v19  ;;  %v32_v45 = vld [vmem:[%s1038_s0 + $0x88] sm:$0xff]  ;;  %v117_v24 = vld [vmem:[%s1038_s0 + $0x330] sm:$0xff] }
  0x11   :  { %v67_v22 = vld [vmem:[%s1038_s0 + $0x1a0] sm:$0xff]  ;;  %249 = vmatpush.msra.mxu2 %v151_v21  ;;  %263 = vmatpush.msra.mxu3 %v48_v28  ;;  %v124_v48 = vld [vmem:[%s1038_s0 + $0x368] sm:$0xff]  ;;  %v49_v21 = vld [vmem:[%s1038_s0 + $0x110] sm:$0xff] }
  0x12   :  { %v111_v23 = vld [vmem:[%s1038_s0 + $0x300] sm:$0xff]  ;;  %198 = vmatpush.msra.mxu0 %v67_v22  ;;  %v28_v49 = vld [vmem:[%s1038_s0 + $0x68] sm:$0xff]  ;;  %v113_v28 = vld [vmem:[%s1038_s0 + $0x310] sm:$0xff] }
  0x13   :  { %v147_v25 = vld [vmem:[%s1038_s0 + $0x420] sm:$0xff]  ;;  %223 = vmatpush.msra.mxu1 %v111_v23  ;;  %264 = vmatpush.msra.mxu3 %v44_v33  ;;  %v120_v52 = vld [vmem:[%s1038_s0 + $0x348] sm:$0xff]  ;;  %v37_v33 = vld [vmem:[%s1038_s0 + $0xb0] sm:$0xff] }
  0x14   :  { %v63_v26 = vld [vmem:[%s1038_s0 + $0x180] sm:$0xff]  ;;  %250 = vmatpush.msra.mxu2 %v147_v25  ;;  %v24_v53 = vld [vmem:[%s1038_s0 + $0x48] sm:$0xff]  ;;  %v45_v25 = vld [vmem:[%s1038_s0 + $0xf0] sm:$0xff] }
  0x15   :  { %v107_v27 = vld [vmem:[%s1038_s0 + $0x2e0] sm:$0xff]  ;;  %199 = vmatpush.msra.mxu0 %v63_v26  ;;  %265 = vmatpush.msra.mxu3 %v40_v37  ;;  %v116_v56 = vld [vmem:[%s1038_s0 + $0x328] sm:$0xff]  ;;  %v783_v26 = vld [vmem:[%s1039_s1 + $0x10] sm:$0xff] }
  0x16   :  { %v143_v29 = vld [vmem:[%s1038_s0 + $0x400] sm:$0xff]  ;;  %224 = vmatpush.msra.mxu1 %v107_v27  ;;  %v20_v58 = vld [vmem:[%s1038_s0 + $0x28] sm:$0xff]  ;;  %v33_v37 = vld [vmem:[%s1038_s0 + $0x90] sm:$0xff] }
  0x17   :  { %v59_v30 = vld [vmem:[%s1038_s0 + $0x160] sm:$0xff]  ;;  %251 = vmatpush.msra.mxu2 %v143_v29  ;;  %266 = vmatpush.msra.mxu3 %v36_v41  ;;  %v112_v59 = vld [vmem:[%s1038_s0 + $0x308] sm:$0xff]  ;;  %v41_v29 = vld [vmem:[%s1038_s0 + $0xd0] sm:$0xff] }
  0x18   :  { %v103_v31 = vld [vmem:[%s1038_s0 + $0x2c0] sm:$0xff]  ;;  %200 = vmatpush.msra.mxu0 %v59_v30  ;;  %v16_v62 = vld [vmem:[%s1038_s0 + $0x8] sm:$0xff]  ;;  %v78_v30 = vld [vmem:[%s1038_s0 + $0x1f8] sm:$0xff]  ;;  %458 = vmatmul.msk.f32.vlgmr.msra.gmra.mxu2 %vm179_vm1, %v783_v26 }
  0x19   :  { %v55_v34 = vld [vmem:[%s1038_s0 + $0x140] sm:$0xff]  ;;  %225 = vmatpush.msra.mxu1 %v103_v31  ;;  %276 = vmatpush.msrb.mxu2 %v140_v32  ;;  %v108_v63 = vld [vmem:[%s1038_s0 + $0x2e8] sm:$0xff]  ;;  %v109_v32 = vld [vmem:[%s1038_s0 + $0x2f0] sm:$0xff] }
  0x1a   :  { %v99_v35 = vld [vmem:[%s1038_s0 + $0x2a0] sm:$0xff]  ;;  %201 = vmatpush.msra.mxu0 %v55_v34  ;;  %267 = vmatpush.msra.mxu3 %v32_v45  ;;  %v104_v3 = vld [vmem:[%s1038_s0 + $0x2c8] sm:$0xff]  ;;  %v74_v34 = vld [vmem:[%s1038_s0 + $0x1d8] sm:$0xff] }
  0x1b   :  { %v51_v38 = vld [vmem:[%s1038_s0 + $0x120] sm:$0xff]  ;;  %226 = vmatpush.msra.mxu1 %v99_v35  ;;  %277 = vmatpush.msrb.mxu2 %v136_v36  ;;  %v100_v7 = vld [vmem:[%s1038_s0 + $0x2a8] sm:$0xff]  ;;  %v105_v36 = vld [vmem:[%s1038_s0 + $0x2d0] sm:$0xff] }
  0x1c   :  { %v95_v39 = vld [vmem:[%s1038_s0 + $0x280] sm:$0xff]  ;;  %202 = vmatpush.msra.mxu0 %v51_v38  ;;  %268 = vmatpush.msra.mxu3 %v28_v49  ;;  %v96_v11 = vld [vmem:[%s1038_s0 + $0x288] sm:$0xff]  ;;  %v29_v41 = vld [vmem:[%s1038_s0 + $0x70] sm:$0xff] }
  0x1d   :  { %v47_v42 = vld [vmem:[%s1038_s0 + $0x100] sm:$0xff]  ;;  %227 = vmatpush.msra.mxu1 %v95_v39  ;;  %278 = vmatpush.msrb.mxu2 %v132_v40  ;;  %v92_v15 = vld [vmem:[%s1038_s0 + $0x268] sm:$0xff]  ;;  %v70_v40 = vld [vmem:[%s1038_s0 + $0x1b8] sm:$0xff] }
  0x1e   :  { %v91_v43 = vld [vmem:[%s1038_s0 + $0x260] sm:$0xff]  ;;  %203 = vmatpush.msra.mxu0 %v47_v42  ;;  %269 = vmatpush.msra.mxu3 %v24_v53  ;;  %v176_v18 = vld [vmem:[%s1038_s0 + $0x508] sm:$0xf] }
  0x1f   :  { %v43_v46 = vld [vmem:[%s1038_s0 + $0xe0] sm:$0xff]  ;;  %228 = vmatpush.msra.mxu1 %v91_v43  ;;  %279 = vmatpush.msrb.mxu2 %v128_v44  ;;  %v88_v19 = vld [vmem:[%s1038_s0 + $0x248] sm:$0xff] }
  0x20   :  { %v87_v47 = vld [vmem:[%s1038_s0 + $0x240] sm:$0xff]  ;;  %204 = vmatpush.msra.mxu0 %v43_v46  ;;  %270 = vmatpush.msra.mxu3 %v20_v58  ;;  %v172_v22 = vld [vmem:[%s1038_s0 + $0x4e8] sm:$0xff] }
  0x21   :  { %v39_v50 = vld [vmem:[%s1038_s0 + $0xc0] sm:$0xff]  ;;  %229 = vmatpush.msra.mxu1 %v87_v47  ;;  %280 = vmatpush.msrb.mxu2 %v124_v48  ;;  %v84_v23 = vld [vmem:[%s1038_s0 + $0x228] sm:$0xff] }
  0x22   :  { %v83_v51 = vld [vmem:[%s1038_s0 + $0x220] sm:$0xff]  ;;  %205 = vmatpush.msra.mxu0 %v39_v50  ;;  %271 = vmatpush.msra.mxu3 %v16_v62  ;;  %v80_v27 = vld [vmem:[%s1038_s0 + $0x208] sm:$0xff] }
  0x23   :  { %v35_v54 = vld [vmem:[%s1038_s0 + $0xa0] sm:$0xff]  ;;  %230 = vmatpush.msra.mxu1 %v83_v51  ;;  %281 = vmatpush.msrb.mxu2 %v120_v52  ;;  %v168_v31 = vld [vmem:[%s1038_s0 + $0x4c8] sm:$0xff] }
  0x24   :  { %v79_v55 = vld [vmem:[%s1038_s0 + $0x200] sm:$0xff]  ;;  %206 = vmatpush.msra.mxu0 %v35_v54  ;;  %336 = vmatpush.msrb.mxu3 %v141_v0  ;;  %v164_v35 = vld [vmem:[%s1038_s0 + $0x4a8] sm:$0xff] }
  0x25   :  { %v31_v60 = vld [vmem:[%s1038_s0 + $0x80] sm:$0xff]  ;;  %231 = vmatpush.msra.mxu1 %v79_v55  ;;  %282 = vmatpush.msrb.mxu2 %v116_v56  ;;  %v828_v39 = vld [vmem:[%s1039_s1 + $0x8] sm:$0xff] }
  0x26   :  { %207 = vmatpush.msra.mxu0 %v31_v60  ;;  %v27_v2 = vld [vmem:[%s1038_s0 + $0x60] sm:$0xff]  ;;  %337 = vmatpush.msrb.mxu3 %v137_v4  ;;  %v160_v42 = vld [vmem:[%s1038_s0 + $0x488] sm:$0xff] }
  0x27   :  { %316 = vmatpush.msrb.mxu1 %v77_v57  ;;  %283 = vmatpush.msrb.mxu2 %v112_v59  ;;  %v23_v6 = vld [vmem:[%s1038_s0 + $0x40] sm:$0xff] }
  0x28   :  { %208 = vmatpush.msra.mxu0 %v27_v2  ;;  %v19_v10 = vld [vmem:[%s1038_s0 + $0x20] sm:$0xff]  ;;  %338 = vmatpush.msrb.mxu3 %v133_v8 }
  0x29   :  { %317 = vmatpush.msrb.mxu1 %v73_v61  ;;  %284 = vmatpush.msrb.mxu2 %v108_v63  ;;  %v15_v14 = vld [vmem:[%s1038_s0] sm:$0xff] }
  0x2a   :  { %209 = vmatpush.msra.mxu0 %v23_v6  ;;  %339 = vmatpush.msrb.mxu3 %v129_v12  ;;  %v823_v38 = vld [vmem:[%s1039_s1] sm:$0xff] }
  0x2b   :  { %318 = vmatpush.msrb.mxu1 %v69_v1  ;;  %285 = vmatpush.msrb.mxu2 %v104_v3 }
  0x2c   :  { %210 = vmatpush.msra.mxu0 %v19_v10  ;;  %340 = vmatpush.msrb.mxu3 %v125_v16 }
  0x2d   :  { %319 = vmatpush.msrb.mxu1 %v65_v5  ;;  %286 = vmatpush.msrb.mxu2 %v100_v7 }
  0x2e   :  { %211 = vmatpush.msra.mxu0 %v15_v14  ;;  %341 = vmatpush.msrb.mxu3 %v121_v20 }
  0x2f   :  { %320 = vmatpush.msrb.mxu1 %v61_v9  ;;  %287 = vmatpush.msrb.mxu2 %v96_v11 }
  0x30   :  { %459 = vmatpush.msk.msrb.mxu0 %vm183_vm0, %v176_v18  ;;  %342 = vmatpush.msrb.mxu3 %v117_v24 }
  0x31   :  { %321 = vmatpush.msrb.mxu1 %v57_v13  ;;  %288 = vmatpush.msrb.mxu2 %v92_v15 }
  0x32   :  { %304 = vmatpush.msrb.mxu0 %v172_v22  ;;  %343 = vmatpush.msrb.mxu3 %v113_v28 }
  0x33   :  { %322 = vmatpush.msrb.mxu1 %v53_v17  ;;  %289 = vmatpush.msrb.mxu2 %v88_v19 }
  0x34   :  { %305 = vmatpush.msrb.mxu0 %v168_v31  ;;  %344 = vmatpush.msrb.mxu3 %v109_v32 }
  0x35   :  { %323 = vmatpush.msrb.mxu1 %v49_v21  ;;  %290 = vmatpush.msrb.mxu2 %v84_v23 }
  0x36   :  { %306 = vmatpush.msrb.mxu0 %v164_v35  ;;  %345 = vmatpush.msrb.mxu3 %v105_v36 }
  0x37   :  { %324 = vmatpush.msrb.mxu1 %v45_v25  ;;  %291 = vmatpush.msrb.mxu2 %v80_v27 }
  0x39   :  { %325 = vmatpush.msrb.mxu1 %v41_v29  ;;  %376 = vmatpush.msra.mxu2 %v78_v30 }
  0x3b   :  { %326 = vmatpush.msrb.mxu1 %v37_v33  ;;  %377 = vmatpush.msra.mxu2 %v74_v34 }
  0x3c   :  { %7 = vsyncpa [#allocation3], 0  ;;  %212 = vmatmul.f32.vlgmr.msra.gmra.mxu0 %v823_v38  ;;  %v101_v43 = vld [vmem:[%s1038_s0 + $0x2b0] sm:$0xff]  ;;  %v66_v44 = vld [vmem:[%s1038_s0 + $0x198] sm:$0xff]  ;;  %232 = vmatmul.f32.vlgmr.msra.gmra.mxu1 %v828_v39  ;;  %s448_s5 = sshll.u32 %s1040_s2, 4  ;;  %vm439_vm2 = vcmask 130048   ;;  %s449_s5 = int_to_ptr.hbm [resolvable:$true] %s448_s5 }
  0x3d   :  { %327 = vmatpush.msrb.mxu1 %v33_v37  ;;  %v25_v45 = vld [vmem:[%s1038_s0 + $0x50] sm:$0xff]  ;;  %378 = vmatpush.msra.mxu2 %v70_v40  ;;  %v156_v46 = vld [vmem:[%s1038_s0 + $0x468] sm:$0xff]  ;;  %v62_v48 = vld [vmem:[%s1038_s0 + $0x178] sm:$0xff] }
  0x3e   :  { %307 = vmatpush.msrb.mxu0 %v160_v42  ;;  %v97_v47 = vld [vmem:[%s1038_s0 + $0x290] sm:$0xff]  ;;  %346 = vmatpush.msrb.mxu3 %v101_v43  ;;  %v152_v50 = vld [vmem:[%s1038_s0 + $0x448] sm:$0xff]  ;;  %v58_v52 = vld [vmem:[%s1038_s0 + $0x158] sm:$0xff] }
  0x3f   :  { %328 = vmatpush.msrb.mxu1 %v29_v41  ;;  %v21_v49 = vld [vmem:[%s1038_s0 + $0x30] sm:$0xff]  ;;  %379 = vmatpush.msra.mxu2 %v66_v44  ;;  %v148_v54 = vld [vmem:[%s1038_s0 + $0x428] sm:$0xff]  ;;  %v142_v55 = vld [vmem:[%s1038_s0 + $0x3f8] sm:$0xff] }
  0x40   :  { %308 = vmatpush.msrb.mxu0 %v156_v46  ;;  %v93_v51 = vld [vmem:[%s1038_s0 + $0x270] sm:$0xff]  ;;  %347 = vmatpush.msrb.mxu3 %v97_v47  ;;  %v54_v57 = vld [vmem:[%s1038_s0 + $0x138] sm:$0xff]  ;;  %v144_v58 = vld [vmem:[%s1038_s0 + $0x408] sm:$0xff] }
  0x41   :  { %329 = vmatpush.msrb.mxu1 %v25_v45  ;;  %v17_v53 = vld [vmem:[%s1038_s0 + $0x10] sm:$0xff]  ;;  %380 = vmatpush.msra.mxu2 %v62_v48  ;;  %v138_v59 = vld [vmem:[%s1038_s0 + $0x3d8] sm:$0xff] }
  0x42   :  { %309 = vmatpush.msrb.mxu0 %v152_v50  ;;  %v89_v56 = vld [vmem:[%s1038_s0 + $0x250] sm:$0xff]  ;;  %348 = vmatpush.msrb.mxu3 %v93_v51  ;;  %v50_v62 = vld [vmem:[%s1038_s0 + $0x118] sm:$0xff] }
  0x43   :  { %330 = vmatpush.msrb.mxu1 %v21_v49  ;;  %381 = vmatpush.msra.mxu2 %v58_v52  ;;  %v85_v60 = vld [vmem:[%s1038_s0 + $0x230] sm:$0xff]  ;;  %v134_v63 = vld [vmem:[%s1038_s0 + $0x3b8] sm:$0xff] }
  0x44   :  { %310 = vmatpush.msrb.mxu0 %v148_v54  ;;  %349 = vmatpush.msrb.mxu3 %v89_v56  ;;  %v177_v61 = vld [vmem:[%s1038_s0 + $0x510] sm:$0xf]  ;;  %v130_v1 = vld [vmem:[%s1038_s0 + $0x398] sm:$0xff] }
  0x45   :  { %331 = vmatpush.msrb.mxu1 %v17_v53  ;;  %382 = vmatpush.msra.mxu2 %v54_v57  ;;  %v81_v0 = vld [vmem:[%s1038_s0 + $0x210] sm:$0xff]  ;;  %v46_v3 = vld [vmem:[%s1038_s0 + $0xf8] sm:$0xff] }
  0x46   :  { %311 = vmatpush.msrb.mxu0 %v144_v58  ;;  %350 = vmatpush.msrb.mxu3 %v85_v60  ;;  %v173_v2 = vld [vmem:[%s1038_s0 + $0x4f0] sm:$0xff]  ;;  %v178_v4 = vld [vmem:[%s1038_s0 + $0x518] sm:$0xf] }
  0x47   :  { %396 = vmatpush.msra.mxu1 %v142_v55  ;;  %383 = vmatpush.msra.mxu2 %v50_v62  ;;  %v126_v5 = vld [vmem:[%s1038_s0 + $0x378] sm:$0xff]  ;;  %v169_v6 = vld [vmem:[%s1038_s0 + $0x4d0] sm:$0xff] }
  0x48   :  { %461 = vmatpush.msk.msra.mxu0 %vm183_vm0, %v177_v61  ;;  %272 = vmatmul.f32.vlgmr.msra.gmra.mxu3 %v823_v38  ;;  %v42_v7 = vld [vmem:[%s1038_s0 + $0xd8] sm:$0xff]  ;;  %v165_v10 = vld [vmem:[%s1038_s0 + $0x4b0] sm:$0xff] }
  0x49   :  { %397 = vmatpush.msra.mxu1 %v138_v59  ;;  %351 = vmatpush.msrb.mxu3 %v81_v0  ;;  %v174_v8 = vld [vmem:[%s1038_s0 + $0x4f8] sm:$0xff]  ;;  %v161_v14 = vld [vmem:[%s1038_s0 + $0x490] sm:$0xff] }
  0x4a   :  { %292 = vmatmul.f32.vlgmr.msrb.gmra.mxu2 %v828_v39  ;;  %364 = vmatpush.msra.mxu0 %v173_v2  ;;  %v122_v9 = vld [vmem:[%s1038_s0 + $0x358] sm:$0xff]  ;;  %v157_v18 = vld [vmem:[%s1038_s0 + $0x470] sm:$0xff] }
  0x4b   :  { %398 = vmatpush.msra.mxu1 %v134_v63  ;;  %384 = vmatpush.msra.mxu2 %v46_v3  ;;  %v38_v11 = vld [vmem:[%s1038_s0 + $0xb8] sm:$0xff]  ;;  %v153_v22 = vld [vmem:[%s1038_s0 + $0x450] sm:$0xff] }
  0x4c   :  { %463 = vmatpush.msk.msra.mxu3 %vm183_vm0, %v178_v4  ;;  %365 = vmatpush.msra.mxu0 %v169_v6  ;;  %v170_v12 = vld [vmem:[%s1038_s0 + $0x4d8] sm:$0xff]  ;;  %v149_v27 = vld [vmem:[%s1038_s0 + $0x430] sm:$0xff] }
  0x4d   :  { %399 = vmatpush.msra.mxu1 %v130_v1  ;;  %385 = vmatpush.msra.mxu2 %v42_v7  ;;  %v118_v13 = vld [vmem:[%s1038_s0 + $0x338] sm:$0xff]  ;;  %v145_v32 = vld [vmem:[%s1038_s0 + $0x410] sm:$0xff] }
  0x4e   :  { %424 = vmatpush.msra.mxu3 %v174_v8  ;;  %366 = vmatpush.msra.mxu0 %v165_v10  ;;  %v34_v15 = vld [vmem:[%s1038_s0 + $0x98] sm:$0xff] }
  0x4f   :  { %400 = vmatpush.msra.mxu1 %v126_v5  ;;  %v166_v16 = vld [vmem:[%s1038_s0 + $0x4b8] sm:$0xff]  ;;  %386 = vmatpush.msra.mxu2 %v38_v11 }
  0x50   :  { %v114_v17 = vld [vmem:[%s1038_s0 + $0x318] sm:$0xff]  ;;  %425 = vmatpush.msra.mxu3 %v170_v12  ;;  %367 = vmatpush.msra.mxu0 %v161_v14 }
  0x51   :  { %401 = vmatpush.msra.mxu1 %v122_v9  ;;  %387 = vmatpush.msra.mxu2 %v34_v15  ;;  %v110_v19 = vld [vmem:[%s1038_s0 + $0x2f8] sm:$0xff] }
  0x52   :  { %426 = vmatpush.msra.mxu3 %v166_v16  ;;  %v30_v20 = vld [vmem:[%s1038_s0 + $0x78] sm:$0xff]  ;;  %460 = vmatmul.msk.f32.vlgmr.msrb.gmra.mxu0 %vm179_vm1, %v783_v26 }
  0x53   :  { %402 = vmatpush.msra.mxu1 %v118_v13  ;;  %v162_v21 = vld [vmem:[%s1038_s0 + $0x498] sm:$0xff]  ;;  %352 = vmatmul.f32.vlgmr.msrb.gmra.mxu3 %v828_v39 }
  0x54   :  { %368 = vmatpush.msra.mxu0 %v157_v18  ;;  %v106_v23 = vld [vmem:[%s1038_s0 + $0x2d8] sm:$0xff]  ;;  %388 = vmatpush.msra.mxu2 %v30_v20 }
  0x55   :  { %403 = vmatpush.msra.mxu1 %v114_v17  ;;  %v26_v24 = vld [vmem:[%s1038_s0 + $0x58] sm:$0xff]  ;;  %427 = vmatpush.msra.mxu3 %v162_v21 }
  0x56   :  { %v158_v25 = vld [vmem:[%s1038_s0 + $0x478] sm:$0xff]  ;;  %369 = vmatpush.msra.mxu0 %v153_v22  ;;  %389 = vmatpush.msra.mxu2 %v26_v24 }
  0x57   :  { %404 = vmatpush.msra.mxu1 %v110_v19  ;;  %v102_v28 = vld [vmem:[%s1038_s0 + $0x2b8] sm:$0xff]  ;;  %428 = vmatpush.msra.mxu3 %v158_v25 }
  0x58   :  { %v22_v29 = vld [vmem:[%s1038_s0 + $0x38] sm:$0xff]  ;;  %370 = vmatpush.msra.mxu0 %v149_v27  ;;  %332 = vmatmul.f32.vlgmr.msrb.gmra.mxu1 %v823_v38 }
  0x59   :  { %405 = vmatpush.msra.mxu1 %v106_v23  ;;  %v154_v30 = vld [vmem:[%s1038_s0 + $0x458] sm:$0xff]  ;;  %390 = vmatpush.msra.mxu2 %v22_v29 }
  0x5a   :  { %v98_v31 = vld [vmem:[%s1038_s0 + $0x298] sm:$0xff]  ;;  %429 = vmatpush.msra.mxu3 %v154_v30  ;;  %371 = vmatpush.msra.mxu0 %v145_v32 }
  0x5b   :  { %406 = vmatpush.msra.mxu1 %v102_v28  ;;  %v18_v33 = vld [vmem:[%s1038_s0 + $0x18] sm:$0xff]  ;;  %462 = vmatmul.msk.f32.vlgmr.msra.gmra.mxu0 %vm179_vm1, %v783_v26 }
  0x5c   :  { %v150_v34 = vld [vmem:[%s1038_s0 + $0x438] sm:$0xff]  ;;  %391 = vmatpush.msra.mxu2 %v18_v33 }
  0x5d   :  { %v94_v35 = vld [vmem:[%s1038_s0 + $0x278] sm:$0xff]  ;;  %407 = vmatpush.msra.mxu1 %v98_v31  ;;  %430 = vmatpush.msra.mxu3 %v150_v34 }
  0x5e   :  { %v146_v36 = vld [vmem:[%s1038_s0 + $0x418] sm:$0xff]  ;;  %392 = vmatmul.f32.vlgmr.msra.gmra.mxu2 %v823_v38 }
  0x5f   :  { %v90_v37 = vld [vmem:[%s1038_s0 + $0x258] sm:$0xff]  ;;  %408 = vmatpush.msra.mxu1 %v94_v35  ;;  %431 = vmatpush.msra.mxu3 %v146_v36 }
  0x60   :  { %v86_v40 = vld [vmem:[%s1038_s0 + $0x238] sm:$0xff]  ;;  %464 = vmatmul.msk.f32.vlgmr.msra.gmra.mxu3 %vm179_vm1, %v783_v26 }
  0x61   :  { %409 = vmatpush.msra.mxu1 %v90_v37  ;;  %v82_v41 = vld [vmem:[%s1038_s0 + $0x218] sm:$0xff]  ;;  %s492_s0 = smov [#allocation2]  }
  0x62   :  { %s446_s30 = sshll.u32 %s492_s0, 4  ;;  %s447_s30 = int_to_ptr.vmem [resolvable:$true] %s446_s30 }
  0x63   :  { %410 = vmatpush.msra.mxu1 %v86_v40 }
  0x65   :  { %411 = vmatpush.msra.mxu1 %v82_v41 }
  0x66   :  { %412 = vmatmul.f32.vlgmr.msra.gmra.mxu1 %v828_v39 }
  0x9b   :  { %v253_v38 = vpop.f32.mrf.mxu2 }
  0xb9   :  { %v213_v42 = vpop.f32.mrf.mxu0  ;;  %v233_v43 = vpop.f32.mrf.mxu1 }
  0xba   :  { %v234_v44 = vadd.f32 %v233_v43, %v213_v42 }
  0xbc   :  { %v254_v45 = vadd.f32 %v253_v38, %v234_v44 }
  0xbe   :  { %436 = vst [vmem:[#allocation2] sm:$0xff] %v254_v45 }
  0xcb   :  { %v273_v46 = vpop.f32.mrf.mxu3 }
  0xcd   :  { %v293_v47 = vpop.f32.mrf.mxu2 }
  0xce   :  { %v294_v48 = vadd.f32 %v293_v47, %v273_v46 }
  0xcf   :  { %v313_v49 = vpop.f32.mrf.mxu0 }
  0xd0   :  { %v314_v50 = vadd.f32 %v313_v49, %v294_v48 }
  0xd2   :  { %437 = vst [vmem:[#allocation2 + $0x8] sm:$0xff] %v314_v50 }
  0xd5   :  { %v333_v26 = vpop.f32.mrf.mxu1 }
  0xd6   :  { %v353_v51 = vpop.f32.mrf.mxu3 }
  0xd7   :  { %v354_v52 = vadd.f32 %v353_v51, %v333_v26 }
  0xd8   :  { %v373_v53 = vpop.f32.mrf.mxu0 }
  0xd9   :  { %v374_v54 = vadd.f32 %v373_v53, %v354_v52 }
  0xdb   :  { %438 = vst [vmem:[#allocation2 + $0x10] sm:$0xff] %v374_v54 }
  0xe1   :  { %v393_v55 = vpop.f32.mrf.mxu2 }
  0xe3   :  { %v413_v39 = vpop.f32.mrf.mxu1  ;;  %v433_v57 = vpop.f32.mrf.mxu3 }
  0xe4   :  { %v414_v56 = vadd.f32 %v413_v39, %v393_v55 }
  0xe6   :  { %v434_v58 = vadd.f32 %v433_v57, %v414_v56 }
  0xe8   :  { %440 = vst.msk [vmem:[#allocation2 + $0x18] sm:$0xff] %vm439_vm2, %v434_v58 }
  0xe9   :  { %451 = dma.vmem_to_hbm [thread:$0]  %s447_s30, 512, %s449_s5, [#allocation3]  }
  0xea   :  { %490 = dma.done.wait [#allocation3], 512  }
  0xeb   :  { %491 = vsyncadd [#allocation3], 4294966784 }
  0xec   :  { %456 = vsyncpa [#allocation3], 1 }

</bundles_post_ra>
